<compile_context>
chip_gen: v7x
topology: tpu7x:2x2x1
jax: 0.10.0
libtpu: 0.0.40
codegen_flags: <defaults>
</compile_context>

<pallas_src>
import functools

import jax
import jax.numpy as jnp
from jax.experimental import pallas as pl
from jax.experimental.pallas import tpu as pltpu


_TILE_N_MAX = 1024         # rows per grid step (multiple of 128 at scale)
_LANE = 128                # TPU lane width / vocab padding target
_NEG_PAD = -1e30           # Python float (NOT a jnp constant -> not captured)


def _round_up(x, m):
    return ((x + m - 1) // m) * m


# --------------------------------------------------------------------------- kernels
def _logits_and_rowloss(idx, tgt, emb, i, n_valid):
    """Shared tile body: one-hot gather on the MXU + per-row cross-entropy.

    Padded vocab lanes of `emb` already hold -1e30, so no in-kernel lane mask
    is needed; padded rows are zeroed via the n_valid row mask.
    """
    tile_n = idx.shape[0]
    v_pad = emb.shape[1]
    col = jax.lax.broadcasted_iota(jnp.int32, (tile_n, v_pad), 1)

    # Embedding lookup as a one-hot matmul (exact row select).
    # TODO(synk): for non-toy vocab sizes replace with an HBM row gather
    # (scalar-prefetched idx driving pl.Element row blocks); at V=65 the
    # padded 128x128 table is 64 KiB so the MXU path is already mem-bound.
    onehot = (col == idx).astype(emb.dtype)
    logits = jnp.dot(onehot, emb, preferred_element_type=jnp.float32)

    # Cross-entropy; padded lanes are -1e30 -> exp underflows to exactly 0.
    m = jnp.max(logits, axis=-1, keepdims=True)
    lse = m + jnp.log(jnp.sum(jnp.exp(logits - m), axis=-1, keepdims=True))
    tgt_logit = jnp.sum(jnp.where(col == tgt, logits, 0.0),
                        axis=-1, keepdims=True)
    per_row = lse - tgt_logit

    # Zero padded rows so the wrapper-side mean over N real rows is exact.
    row = jax.lax.broadcasted_iota(jnp.int32, (tile_n, 1), 0) + i * tile_n
    per_row = jnp.where(row < n_valid, per_row, 0.0)
    return logits, per_row


def _bigram_embed_kernel(idx_ref, emb_ref, logits_ref):
    """Embedding gather only (targets=None path)."""
    idx = idx_ref[...]                       # (tile_n, 1) int32
    emb = emb_ref[...]                       # (V_pad, V_pad) f32
    tile_n = idx.shape[0]
    v_pad = emb.shape[1]
    col = jax.lax.broadcasted_iota(jnp.int32, (tile_n, v_pad), 1)
    onehot = (col == idx).astype(emb.dtype)
    logits_ref[...] = jnp.dot(onehot, emb, preferred_element_type=jnp.float32)


def _bigram_loss_kernel(idx_ref, tgt_ref, emb_ref, logits_ref, rowloss_ref, *,
                        n_valid):
    """Logits + per-row loss (PyTorch forward with targets)."""
    i = pl.program_id(0)
    logits, per_row = _logits_and_rowloss(
        idx_ref[...], tgt_ref[...], emb_ref[...], i, n_valid)
    logits_ref[...] = logits                 # lane-dense (tile_n, V_pad) store
    rowloss_ref[...] = per_row


def _bigram_loss_only_kernel(idx_ref, tgt_ref, emb_ref, rowloss_ref, *,
                             n_valid):
    """Per-row loss only -- skips the dominant (N, V_pad) logits HBM write."""
    i = pl.program_id(0)
    _, per_row = _logits_and_rowloss(
        idx_ref[...], tgt_ref[...], emb_ref[...], i, n_valid)
    rowloss_ref[...] = per_row


# --------------------------------------------------------------------------- helpers
def pad_embedding_table(emb_table):
    """Pad (V, V) -> (V_pad, V_pad) with padded COLUMNS = -1e30 (lane mask
    baked in).  Called once per model (hoisted out of the per-step jit)."""
    V = emb_table.shape[0]
    V_pad = _round_up(V, _LANE)
    return jnp.full((V_pad, V_pad), _NEG_PAD, jnp.float32).at[:V, :V].set(
        emb_table.astype(jnp.float32))


def _pad_rows(x, rows):
    pad = rows - x.shape[0]
    if pad:
        x = jnp.pad(x, ((0, pad), (0, 0)))
    return x


def _tiling(n):
    tile_n = min(_TILE_N_MAX, _round_up(n, 8))
    if tile_n > _LANE:                       # keep multiple of 128 at scale
        tile_n = min(_TILE_N_MAX, _round_up(tile_n, _LANE))
    n_pad = _round_up(n, tile_n)
    return tile_n, n_pad, n_pad // tile_n


def _compiler_params():
    # TODO(synk): on v7x try pltpu.CORE_PARALLEL / an explicit core_map axis
    # for a guaranteed 2-TensorCore split of the row grid.
    return pltpu.CompilerParams(
        dimension_semantics=("parallel",),
        vmem_limit_bytes=32 * 1024 * 1024,
    )


# --------------------------------------------------------------------------- wrappers
@functools.partial(jax.jit, static_argnames=("vocab_size",))
def bigram_logits(idx, emb_padded, *, vocab_size):
    """targets=None path: logits (B, T, V)."""
    B, T = idx.shape
    V_pad = emb_padded.shape[1]
    N = B * T
    tile_n, N_pad, num_tiles = _tiling(N)
    idx_p = _pad_rows(idx.reshape(N, 1).astype(jnp.int32), N_pad)

    cost = pl.CostEstimate(
        flops=2 * N_pad * V_pad * V_pad,
        transcendentals=0,
        bytes_accessed=N_pad * 4 + V_pad * V_pad * 4 + N_pad * V_pad * 4)
    logits_p = pl.pallas_call(
        _bigram_embed_kernel,
        out_shape=jax.ShapeDtypeStruct((N_pad, V_pad), jnp.float32),
        grid=(num_tiles,),
        in_specs=[
            pl.BlockSpec((tile_n, 1), lambda i: (i, 0)),
            pl.BlockSpec((V_pad, V_pad), lambda i: (0, 0)),
        ],
        out_specs=pl.BlockSpec((tile_n, V_pad), lambda i: (i, 0)),
        compiler_params=_compiler_params(),
        cost_estimate=cost,
    )(idx_p, emb_padded)
    # TODO(synk): returning the V_pad-padded lane-dense logits (no slice) to a
    # fused downstream consumer would remove this extra XLA copy; sliced here
    # to match the PyTorch (B, T, V) contract.
    return logits_p[:N, :vocab_size].reshape(B, T, vocab_size)


@functools.partial(jax.jit, static_argnames=("vocab_size", "loss_only"))
def bigram_logits_and_loss(idx, targets, emb_padded, *, vocab_size,
                           loss_only=False):
    """With-targets path: (logits (B*T, V), scalar loss).  loss_only=True
    skips the logits HBM write entirely and returns (None, loss)."""
    B, T = idx.shape
    V_pad = emb_padded.shape[1]
    N = B * T
    tile_n, N_pad, num_tiles = _tiling(N)
    idx_p = _pad_rows(idx.reshape(N, 1).astype(jnp.int32), N_pad)
    tgt_p = _pad_rows(targets.reshape(N, 1).astype(jnp.int32), N_pad)
    cparams = _compiler_params()

    in_specs = [
        pl.BlockSpec((tile_n, 1), lambda i: (i, 0)),
        pl.BlockSpec((tile_n, 1), lambda i: (i, 0)),
        pl.BlockSpec((V_pad, V_pad), lambda i: (0, 0)),
    ]

    if loss_only:
        cost = pl.CostEstimate(
            flops=2 * N_pad * V_pad * V_pad + 6 * N_pad * V_pad,
            transcendentals=N_pad * V_pad + N_pad,
            bytes_accessed=2 * N_pad * 4 + V_pad * V_pad * 4 + N_pad * 4)
        row_loss = pl.pallas_call(
            functools.partial(_bigram_loss_only_kernel, n_valid=N),
            out_shape=jax.ShapeDtypeStruct((N_pad, 1), jnp.float32),
            grid=(num_tiles,),
            in_specs=in_specs,
            out_specs=pl.BlockSpec((tile_n, 1), lambda i: (i, 0)),
            compiler_params=cparams,
            cost_estimate=cost,
        )(idx_p, tgt_p, emb_padded)
        loss = jnp.sum(row_loss) / jnp.float32(N)
        return None, loss

    cost = pl.CostEstimate(
        flops=2 * N_pad * V_pad * V_pad + 6 * N_pad * V_pad,
        transcendentals=N_pad * V_pad + N_pad,
        bytes_accessed=(2 * N_pad * 4 + V_pad * V_pad * 4
                        + N_pad * V_pad * 4 + N_pad * 4))
    logits_p, row_loss = pl.pallas_call(
        functools.partial(_bigram_loss_kernel, n_valid=N),
        out_shape=(
            jax.ShapeDtypeStruct((N_pad, V_pad), jnp.float32),
            jax.ShapeDtypeStruct((N_pad, 1), jnp.float32),
        ),
        grid=(num_tiles,),
        in_specs=in_specs,
        out_specs=(
            pl.BlockSpec((tile_n, V_pad), lambda i: (i, 0)),
            pl.BlockSpec((tile_n, 1), lambda i: (i, 0)),
        ),
        compiler_params=cparams,
        cost_estimate=cost,
    )(idx_p, tgt_p, emb_padded)

    loss = jnp.sum(row_loss) / jnp.float32(N)    # mean over the N real rows
    logits = logits_p[:N, :vocab_size]           # PyTorch's (B*T, V) view
    return logits, loss


class BigramLanguageModel:
    """JAX/Pallas port of the PyTorch BigramLanguageModel forward pass."""

    def __init__(self, vocab_size, emb_table):
        assert emb_table.shape == (vocab_size, vocab_size)
        self.vocab_size = vocab_size
        # Pad (and column-mask) the table ONCE; reused across all steps.
        self.emb_padded = pad_embedding_table(emb_table)

    def forward(self, idx, targets=None, *, loss_only=False):
        if targets is None:
            return bigram_logits(idx, self.emb_padded,
                                 vocab_size=self.vocab_size), None
        return bigram_logits_and_loss(idx, targets, self.emb_padded,
                                      vocab_size=self.vocab_size,
                                      loss_only=loss_only)

    __call__ = forward

    # TODO(synk): `generate` is an autoregressive host loop with
    # torch.multinomial sampling; only the forward pass is kernelized here.


# --------------------------------------------------------------------------- main
if __name__ == "__main__":
    vocab_size = 65          # tiny-shakespeare-like char vocab
    B, T = 2, 8

    key = jax.random.PRNGKey(0)
    k_emb, k_idx, k_tgt = jax.random.split(key, 3)

    # nn.Embedding default init: N(0, 1)
    emb_table = jax.random.normal(k_emb, (vocab_size, vocab_size),
                                  dtype=jnp.float32)
    idx = jax.random.randint(k_idx, (B, T), 0, vocab_size, dtype=jnp.int32)
    targets = jax.random.randint(k_tgt, (B, T), 0, vocab_size, dtype=jnp.int32)

    model = BigramLanguageModel(vocab_size, emb_table)

    # Pallas forward (with targets)
    logits, loss = model(idx, targets)
    logits = jax.block_until_ready(logits)
    loss = jax.block_until_ready(loss)

    # Pallas forward, loss-only variant (no logits HBM write)
    _, loss2 = model(idx, targets, loss_only=True)
    loss2 = jax.block_until_ready(loss2)

    # Pallas forward (targets=None path)
    logits3d, loss_none = model(idx)
    logits3d = jax.block_until_ready(logits3d)

    # Pure-JAX reference
    ref_logits3d = emb_table[idx]                                  # (B, T, V)
    ref_logits = ref_logits3d.reshape(B * T, vocab_size)
    ref_lse = jax.nn.logsumexp(ref_logits, axis=-1)
    ref_tgt = jnp.take_along_axis(ref_logits, targets.reshape(-1, 1),
                                  axis=-1)[:, 0]
    ref_loss = jnp.mean(ref_lse - ref_tgt)

    assert logits.shape == (B * T, vocab_size)
    assert logits3d.shape == (B, T, vocab_size)
    assert loss_none is None
    assert jnp.allclose(logits, ref_logits, atol=1e-5, rtol=1e-5)
    assert jnp.allclose(logits3d, ref_logits3d, atol=1e-5, rtol=1e-5)
    assert jnp.allclose(loss, ref_loss, atol=1e-5, rtol=1e-5)
    assert jnp.allclose(loss2, ref_loss, atol=1e-5, rtol=1e-5)

    print("KERNEL_OK")
</pallas_src>

<mosaic_0001>
module attributes {stable_mosaic.version = 11 : i64} {
  func.func @_bigram_loss_kernel(%arg0: i32, %arg1: memref<16x1xi32, #tpu.memory_space<vmem>>, %arg2: memref<16x1xi32, #tpu.memory_space<vmem>>, %arg3: memref<128x128xf32, #tpu.memory_space<vmem>>, %arg4: memref<16x128xf32, #tpu.memory_space<vmem>>, %arg5: memref<16x1xf32, #tpu.memory_space<vmem>>) attributes {dimension_semantics = [#tpu.dimension_semantics<parallel>], iteration_bounds = array<i64: 1>, scalar_prefetch = 0 : i64, scratch_operands = 0 : i64, tpu.core_type = #tpu.core_type<tc>, window_params = [{transform_indices = @transform_0, window_bounds = array<i64: 16, 1>}, {transform_indices = @transform_1, window_bounds = array<i64: 16, 1>}, {pipeline_mode = #tpu.pipeline_mode<synchronous>, transform_indices = @transform_2, window_bounds = array<i64: 128, 128>}, {transform_indices = @transform_3, window_bounds = array<i64: 16, 128>}, {transform_indices = @transform_4, window_bounds = array<i64: 16, 1>}]} {
    %c0 = arith.constant 0 : index
    %c0_0 = arith.constant 0 : index
    %0 = vector.load %arg1[%c0, %c0_0] : memref<16x1xi32, #tpu.memory_space<vmem>>, vector<16x1xi32>
    %c0_1 = arith.constant 0 : index
    %c0_2 = arith.constant 0 : index
    %1 = vector.load %arg2[%c0_1, %c0_2] : memref<16x1xi32, #tpu.memory_space<vmem>>, vector<16x1xi32>
    %c0_3 = arith.constant 0 : index
    %c0_4 = arith.constant 0 : index
    %2 = vector.load %arg3[%c0_3, %c0_4] : memref<128x128xf32, #tpu.memory_space<vmem>>, vector<128x128xf32>
    %3 = tpu.iota {dimensions = array<i32: 1>} : vector<16x128xi32>
    %4 = vector.broadcast %0 : vector<16x1xi32> to vector<16x128xi32>
    %5 = arith.cmpi eq, %3, %4 : vector<16x128xi32>
    %6 = arith.extui %5 : vector<16x128xi1> to vector<16x128xi32>
    %7 = arith.sitofp %6 : vector<16x128xi32> to vector<16x128xf32>
    %cst = arith.constant dense<0.000000e+00> : vector<16x128xf32>
    %8 = tpu.matmul %7, %2, %cst {dimension_numbers = #tpu.dot_dimension_numbers<[1], [0], [0], [1], [0, 0, 1, 1], [], []>} : vector<16x128xf32>, vector<128x128xf32>, vector<16x128xf32> -> vector<16x128xf32>
    %cst_5 = arith.constant dense<0xFF800000> : vector<16xf32>
    %9 = vector.multi_reduction <maximumf>, %8, %cst_5 [1] : vector<16x128xf32> to vector<16xf32>
    %10 = vector.shape_cast %9 : vector<16xf32> to vector<16x1xf32>
    %11 = vector.broadcast %10 : vector<16x1xf32> to vector<16x128xf32>
    %12 = arith.subf %8, %11 : vector<16x128xf32>
    %13 = math.exp %12 : vector<16x128xf32>
    %cst_6 = arith.constant dense<0.000000e+00> : vector<16xf32>
    %14 = vector.multi_reduction <add>, %13, %cst_6 [1] : vector<16x128xf32> to vector<16xf32>
    %15 = vector.shape_cast %14 : vector<16xf32> to vector<16x1xf32>
    %16 = math.log %15 : vector<16x1xf32>
    %17 = arith.addf %10, %16 : vector<16x1xf32>
    %18 = vector.broadcast %1 : vector<16x1xi32> to vector<16x128xi32>
    %19 = arith.cmpi eq, %3, %18 : vector<16x128xi32>
    %cst_7 = arith.constant 0.000000e+00 : f32
    %20 = vector.broadcast %cst_7 : f32 to vector<16x128xf32>
    %21 = arith.select %19, %8, %20 : vector<16x128xi1>, vector<16x128xf32>
    %cst_8 = arith.constant dense<0.000000e+00> : vector<16xf32>
    %22 = vector.multi_reduction <add>, %21, %cst_8 [1] : vector<16x128xf32> to vector<16xf32>
    %23 = vector.shape_cast %22 : vector<16xf32> to vector<16x1xf32>
    %24 = arith.subf %17, %23 : vector<16x1xf32>
    %25 = tpu.iota {dimensions = array<i32: 0>} : vector<16x1xi32>
    %c16_i32 = arith.constant 16 : i32
    %26 = arith.muli %arg0, %c16_i32 : i32
    %27 = vector.broadcast %26 : i32 to vector<16x1xi32>
    %28 = arith.addi %25, %27 : vector<16x1xi32>
    %c16_i32_9 = arith.constant 16 : i32
    %29 = vector.broadcast %c16_i32_9 : i32 to vector<16x1xi32>
    %30 = arith.cmpi slt, %28, %29 : vector<16x1xi32>
    %cst_10 = arith.constant 0.000000e+00 : f32
    %31 = vector.broadcast %cst_10 : f32 to vector<16x1xf32>
    %32 = arith.select %30, %24, %31 : vector<16x1xi1>, vector<16x1xf32>
    %c0_11 = arith.constant 0 : index
    %c0_12 = arith.constant 0 : index
    %33 = vector.load %arg4[%c0_11, %c0_12] : memref<16x128xf32, #tpu.memory_space<vmem>>, vector<16x128xf32>
    tpu.vector_store %arg4[%c0_11, %c0_12], %8 {strides = array<i32>} : memref<16x128xf32, #tpu.memory_space<vmem>>, vector<16x128xf32>,
    %c0_13 = arith.constant 0 : index
    %c0_14 = arith.constant 0 : index
    %34 = vector.load %arg5[%c0_13, %c0_14] : memref<16x1xf32, #tpu.memory_space<vmem>>, vector<16x1xf32>
    tpu.vector_store %arg5[%c0_13, %c0_14], %32 {strides = array<i32>} : memref<16x1xf32, #tpu.memory_space<vmem>>, vector<16x1xf32>,
    return
  }
  func.func @transform_0(%arg0: i32) -> (i32, i32) {
    %c0_i32 = arith.constant 0 : i32
    %c0_i32_0 = arith.constant 0 : i32
    return %arg0, %c0_i32 : i32, i32
  }
  func.func @transform_1(%arg0: i32) -> (i32, i32) {
    %c0_i32 = arith.constant 0 : i32
    %c0_i32_0 = arith.constant 0 : i32
    return %arg0, %c0_i32 : i32, i32
  }
  func.func @transform_2(%arg0: i32) -> (i32, i32) {
    %c0_i32 = arith.constant 0 : i32
    %c0_i32_0 = arith.constant 0 : i32
    %c0_i32_1 = arith.constant 0 : i32
    return %c0_i32, %c0_i32_0 : i32, i32
  }
  func.func @transform_3(%arg0: i32) -> (i32, i32) {
    %c0_i32 = arith.constant 0 : i32
    %c0_i32_0 = arith.constant 0 : i32
    return %arg0, %c0_i32 : i32, i32
  }
  func.func @transform_4(%arg0: i32) -> (i32, i32) {
    %c0_i32 = arith.constant 0 : i32
    %c0_i32_0 = arith.constant 0 : i32
    return %arg0, %c0_i32 : i32, i32
  }
}

</mosaic_0001>

<bundles_post_ra>
// kernel: bigram_logits_and_loss.1
= control target key start
LH: loop header
LB: loop body
LE: loop exit
PB: predicated region body
PF: predicated region fallthrough
CT: control target
= control target key end

     0   :  { %10 = vsyncpa [#allocation3], 0  ;;  %s445_s0 = inlined_call_operand.vmem [shape: s32[16,1], index: 0, kind: input, shape index: {}]   ;;  %s446_s1 = inlined_call_operand.vmem [shape: s32[16,1], index: 1, kind: input, shape index: {}]   ;;  %s447_s2 = inlined_call_operand.hbm [shape: f32[128,128], index: 2, kind: input, shape index: {}]   ;;  %s448_s3 = inlined_call_operand.hbm [shape: f32[16,128], index: 3, kind: output, shape index: {0}]   ;;  %s449_s4 = inlined_call_operand.vmem [shape: f32[16,1], index: 4, kind: output, shape index: {1}]  }
   0x1   :  { %11 = vsyncpa [#allocation4], 0  ;;  %s366_s15 = smov [#allocation2]   ;;  %s318_s19 = scalar_lea.hbm %s447_s2, 2048 }
   0x2   :  { %s21_s16 = sshll.u32 %s366_s15, 4  ;;  %p319_p0 = scmp.ne.s32.totalorder %s447_s2, %s318_s19  ;;  %s22_s16 = int_to_ptr.vmem [resolvable:$true] %s21_s16 }
   0x3   :  { %p322_p1 = scmp.lt.u32.totalorder %s318_s19, %s447_s2 }
   0x5   :  { %p324_p2 = pnand %p322_p1, %p319_p0 }
   0x7   :  { %327 = shalt.err (!%p324_p2)
}
   0x8   :  { %s328_s24 = scalar_lea.vmem %s22_s16, 2048  ;;  %p333_p4 = scmp.lt.s32.totalorder %s22_s16, %s22_s16 }
   0x9   :  { %p329_p3 = scmp.ne.s32.totalorder %s22_s16, %s328_s24  ;;  %p334_p5 = scmp.lt.s32.totalorder %s328_s24, %s328_s24 }
   0xb   :  { %p335_p6 = por %p334_p5, %p333_p4 }
   0xd   :  { %p336_p7 = pnand %p335_p6, %p329_p3 }
   0xf   :  { %339 = shalt.err (!%p336_p7)
}
  0x10   :  { %s367_s25 = smov 128   ;;  %s368_s26 = smov 8  }
  0x11   :  { %27 = dma.hbm_to_vmem [thread:$0]  %s447_s2, 2048, %s22_s16, [#allocation3], %s367_s25, %s367_s25, %s368_s26  }
  0x12   :  { %362 = dma.done.wait [#allocation3], 2048  }
  0x13   :  { %363 = vsyncadd [#allocation3], 4294965248  ;;  %v369_v0 = vmov 0   ;;  %v31_v1 = vld [vmem:[%s445_s0] sm:$0xff]  ;;  %v36_v3 = vld [vmem:[#allocation2 + $0x8] sm:$0xff]  ;;  %v51_v28 = vlaneseq  ;;  %v370_v31 = vmov 1.0  }
  0x14   :  { %308 = vset.pattern.permute.xlu0 %v369_v0  ;;  %309 = vset.pattern.permute.xlu1 %v369_v0  ;;  %v35_v2 = vld [vmem:[#allocation2] sm:$0xff]  ;;  %v37_v4 = vld [vmem:[#allocation2 + $0x10] sm:$0xff]  ;;  %v32_v5 = vld [vmem:[%s445_s0 + $0x8] sm:$0xff] }
  0x15   :  { %54 = vperm.xlu0 %308, %v31_v1   ;;  %v270_v6 = vpack.c.bf16 %v36_v3, %v35_v2  ;;  %v38_v7 = vld [vmem:[#allocation2 + $0x18] sm:$0xff]  ;;  %v39_v9 = vld [vmem:[#allocation2 + $0x20] sm:$0xff]  ;;  %v40_v10 = vld [vmem:[#allocation2 + $0x28] sm:$0xff]  ;;  %v52_v29 = vand.u32 127, %v51_v28 }
  0x16   :  { %v274_v8 = vpack.c.bf16 %v38_v7, %v37_v4  ;;  %v33_v11 = vld [vmem:[%s446_s1] sm:$0xff]  ;;  %v278_v12 = vpack.c.bf16 %v40_v10, %v39_v9  ;;  %v41_v13 = vld [vmem:[#allocation2 + $0x30] sm:$0xff]  ;;  %v42_v14 = vld [vmem:[#allocation2 + $0x38] sm:$0xff] }
  0x17   :  { %271 = vmatprep.subr.bf16.mxu0 %v270_v6  ;;  %v282_v15 = vpack.c.bf16 %v42_v14, %v41_v13  ;;  %v43_v16 = vld [vmem:[#allocation2 + $0x40] sm:$0xff]  ;;  %v44_v17 = vld [vmem:[#allocation2 + $0x48] sm:$0xff]  ;;  %v45_v19 = vld [vmem:[#allocation2 + $0x50] sm:$0xff] }
  0x18   :  { %273 = vmatpush3.bf16.msra.mxu0 %v270_v6  ;;  %v286_v18 = vpack.c.bf16 %v44_v17, %v43_v16  ;;  %v46_v20 = vld [vmem:[#allocation2 + $0x58] sm:$0xff]  ;;  %v47_v22 = vld [vmem:[#allocation2 + $0x60] sm:$0xff]  ;;  %v48_v23 = vld [vmem:[#allocation2 + $0x68] sm:$0xff] }
  0x19   :  { %57 = vperm.xlu0 %308, %v32_v5   ;;  %275 = vmatprep.subr.bf16.mxu0 %v274_v8  ;;  %v290_v21 = vpack.c.bf16 %v46_v20, %v45_v19  ;;  %v294_v24 = vpack.c.bf16 %v48_v23, %v47_v22  ;;  %v49_v25 = vld [vmem:[#allocation2 + $0x70] sm:$0xff]  ;;  %v50_v26 = vld [vmem:[#allocation2 + $0x78] sm:$0xff]  ;;  %v34_v35 = vld [vmem:[%s446_s1 + $0x8] sm:$0xff]  ;;  %s371_s1 = smov [#allocation5]  }
  0x1a   :  { %v298_v27 = vpack.c.bf16 %v50_v26, %v49_v25  ;;  %s197_s9 = sshll.u32 %s371_s1, 4  ;;  %s198_s9 = int_to_ptr.vmem [resolvable:$true] %s197_s9 }
  0x1b   :  { %s340_s10 = scalar_lea.vmem %s198_s9, 256  ;;  %p345_p9 = scmp.lt.s32.totalorder %s198_s9, %s198_s9 }
  0x1c   :  { %277 = vmatpush3.bf16.msra.mxu0 %v274_v8  ;;  %p341_p8 = scmp.ne.s32.totalorder %s198_s9, %s340_s10  ;;  %p346_p10 = scmp.lt.s32.totalorder %s340_s10, %s340_s10 }
  0x1d   :  { %161 = vperm.xlu0 %308, %v33_v11   ;;  %279 = vmatprep.subr.bf16.mxu0 %v278_v12 }
  0x1e   :  { %p347_p11 = por %p346_p10, %p345_p9 }
  0x20   :  { %281 = vmatpush3.bf16.msra.mxu0 %v278_v12  ;;  %p348_p12 = pnand %p347_p11, %p341_p8 }
  0x21   :  { %283 = vmatprep.subr.bf16.mxu0 %v282_v15 }
  0x24   :  { %285 = vmatpush3.bf16.msra.mxu0 %v282_v15 }
  0x25   :  { %287 = vmatprep.subr.bf16.mxu0 %v286_v18 }
  0x28   :  { %289 = vmatpush3.bf16.msra.mxu0 %v286_v18 }
  0x29   :  { %291 = vmatprep.subr.bf16.mxu0 %v290_v21 }
  0x2c   :  { %293 = vmatpush3.bf16.msra.mxu0 %v290_v21 }
  0x2d   :  { %295 = vmatprep.subr.bf16.mxu0 %v294_v24 }
  0x30   :  { %297 = vmatpush3.bf16.msra.mxu0 %v294_v24 }
  0x31   :  { %299 = vmatprep.subr.bf16.mxu0 %v298_v27 }
  0x34   :  { %301 = vmatpush3.bf16.msra.mxu0 %v298_v27 }
  0x94   :  { %v55_v30 = vpop.permute.xlu0 %54 }
  0x95   :  { %vm59_vm0 = vcmp.eq.s32.totalorder %v52_v29, %v55_v30 }
  0x96   :  { %267 = vmatprep.mubr.msk.f32.mxu0 %vm59_vm0, %v370_v31 }
  0x98   :  { %v58_v32 = vpop.permute.xlu0 %57 }
  0x99   :  { %vm60_vm1 = vcmp.eq.s32.totalorder %v52_v29, %v58_v32 }
  0x9a   :  { %268 = vmatmul.mubr.msk.f32.vlgmr.msra.gmra.mrb[0].mxu0 %vm60_vm1, %v370_v31 }
  0x9c   :  { %v162_v44 = vpop.permute.xlu0 %161 }
  0x9d   :  { %vm166_vm2 = vcmp.eq.s32.totalorder %v52_v29, %v162_v44 }
 0x16d   :  { %v269_v33 = vpop.f32.mrb[0].mxu0 }
 0x16e   :  { %188 = vst [vmem:[#allocation5 + $0x8] sm:$0xff] %v269_v33  ;;  %142 = vmax.xlane.f32.xlu1 %v269_v33  ;;  %v131_v34 = vpop.f32.mrb[1].mxu0 }
 0x16f   :  { %187 = vst [vmem:[#allocation5] sm:$0xff] %v131_v34  ;;  %v168_v46 = vsel %vm166_vm2, %v131_v34, 0.0 }
 0x172   :  { %140 = vmax.xlane.f32.xlu1 %v131_v34 }
 0x183   :  { %164 = vperm.xlu1 %309, %v34_v35  }
 0x1fb   :  { %v143_v36 = vpop.xlane.xlu1 %142 }
 0x1fc   :  { %v145_v37 = vsub.f32 %v269_v33, %v143_v36 }
 0x1fe   :  { %v148_v38 = vmul.f32 1.442695, %v145_v37 }
 0x1ff   :  { %v141_v39 = vpop.xlane.xlu1 %140 }
 0x200   :  { %310 = vpow2.f32 %v148_v38  ;;  %v144_v40 = vsub.f32 %v131_v34, %v141_v39 }
 0x202   :  { %v146_v41 = vmul.f32 1.442695, %v144_v40 }
 0x203   :  { %v165_v45 = vpop.permute.xlu1 %164 }
 0x204   :  { %312 = vpow2.f32 %v146_v41  ;;  %vm167_vm3 = vcmp.eq.s32.totalorder %v52_v29, %v165_v45 }
 0x205   :  { %v169_v47 = vsel %vm167_vm3, %v269_v33, 0.0 }
 0x20a   :  { %v311_v42 = vpop.eup %310 }
 0x20b   :  { %152 = vadd.xlane.f32.xlu1 %v311_v42 }
 0x20e   :  { %v313_v43 = vpop.eup %312 }
 0x20f   :  { %150 = vadd.xlane.f32.xlu0 %v313_v43 }
 0x213   :  { %170 = vadd.xlane.f32.xlu0 %v168_v46 }
 0x217   :  { %172 = vadd.xlane.f32.xlu0 %v169_v47 }
 0x218   :  { %351 = shalt.err (!%p348_p12)
}
 0x219   :  { %s352_s13 = scalar_lea.hbm %s448_s3, 256 }
 0x21a   :  { %p353_p13 = scmp.ne.s32.totalorder %s448_s3, %s352_s13  ;;  %p356_p0 = scmp.lt.u32.totalorder %s352_s13, %s448_s3 }
 0x21c   :  { %p358_p1 = pnand %p356_p0, %p353_p13 }
 0x21e   :  { %361 = shalt.err (!%p358_p1)
}
 0x21f   :  { %203 = dma.vmem_to_hbm [thread:$0]  %s198_s9, 256, %s448_s3, [#allocation4], %s367_s25, %s367_s25, %s368_s26   ;;  %vm189_vm4 = vcmask 7168  }
 0x298   :  { %v153_v48 = vpop.xlane.xlu1 %152 }
 0x299   :  { %314 = vlog2.f32 %v153_v48 }
 0x29c   :  { %v151_v49 = vpop.xlane.xlu0 %150 }
 0x29d   :  { %316 = vlog2.f32 %v151_v49 }
 0x2a0   :  { %v171_v50 = vpop.xlane.xlu0 %170 }
 0x2a3   :  { %v315_v51 = vpop.eup %314 }
 0x2a4   :  { %v157_v52 = vmul.f32 0.6931472, %v315_v51  ;;  %v173_v55 = vpop.xlane.xlu0 %172 }
 0x2a6   :  { %v159_v53 = vadd.f32 %v157_v52, %v143_v36 }
 0x2a7   :  { %v317_v54 = vpop.eup %316 }
 0x2a8   :  { %v155_v56 = vmul.f32 0.6931472, %v317_v54  ;;  %v175_v57 = vsub.f32 %v159_v53, %v173_v55 }
 0x2aa   :  { %v158_v58 = vadd.f32 %v155_v56, %v141_v39  ;;  %191 = vst.msk [vmem:[%s449_s4 + $0x8] sm:$0xff] %vm189_vm4, %v175_v57 }
 0x2ac   :  { %v174_v59 = vsub.f32 %v158_v58, %v171_v50 }
 0x2ae   :  { %190 = vst.msk [vmem:[%s449_s4] sm:$0xff] %vm189_vm4, %v174_v59 }
 0x2af   :  { %364 = dma.done.wait [#allocation4], 256  }
 0x2b0   :  { %365 = vsyncadd [#allocation4], 4294967040 }
 0x2b1   :  { %211 = vsyncpa [#allocation3], 1 }
 0x2b2   :  { %212 = vsyncpa [#allocation4], 1 }

</bundles_post_ra>
